<compile_context>
chip_gen: v7x
topology: tpu7x:2x2x1
jax: 0.10.0
libtpu: 0.0.40
codegen_flags: <defaults>
</compile_context>

<pallas_src>
import jax
import jax.numpy as jnp
from jax import lax
from jax.experimental import pallas as pl
from jax.experimental.pallas import tpu as pltpu

# small shapes consistent with the module's forward
BATCH = 2            # batch_size
SEQ = 8              # max_len
HIDDEN = 128         # hidden size, padded to a full 128-lane vreg (real BERT: 768)
FFN = 4 * HIDDEN     # 512
VOCAB = 100
TYPE_VOCAB = 2


def _layernorm(x, eps=1e-12):
    mu = jnp.mean(x, axis=-1, keepdims=True)
    var = jnp.mean((x - mu) ** 2, axis=-1, keepdims=True)
    return (x - mu) * lax.rsqrt(var + eps)


def _stable_sigmoid(x):
    # exp of a non-positive argument only -> no overflow for very negative logits
    e = jnp.exp(-jnp.abs(x))
    return jnp.where(x >= 0, 1.0 / (1.0 + e), e / (1.0 + e))


def affinity_kernel(emb_ref, mask_ref, wqkv_ref, wo_ref, w1_ref, w2_ref,
                    head_w_ref, head_b_ref, out_ref):
    """One batch element per grid step: 1-layer encoder + CLS head, 2-D matmuls only."""
    h = emb_ref[...]                                     # (S, H)  f32
    mask = mask_ref[...]                                 # (1, S)  f32
    key_bias = (1.0 - mask) * (-1e9)                     # hoisted once, (1, S)

    # --- fused QKV projection: (S,H) x (H,3H), bf16 MXU, f32 accumulate ---
    h_bf = h.astype(jnp.bfloat16)
    qkv = jnp.dot(h_bf, wqkv_ref[...],
                  preferred_element_type=jnp.float32)    # (S, 3H)
    scale = 1.0 / jnp.sqrt(jnp.float32(HIDDEN))
    q = qkv[:, 0:HIDDEN] * scale                         # fold 1/sqrt(H) into q
    k = qkv[:, HIDDEN:2 * HIDDEN]
    v = qkv[:, 2 * HIDDEN:3 * HIDDEN]

    # --- attention scores + masked softmax (f32 math) ---
    scores = lax.dot_general(q.astype(jnp.bfloat16), k.astype(jnp.bfloat16),
                             (((1,), (1,)), ((), ())),
                             preferred_element_type=jnp.float32)   # (S, S)
    scores = scores + key_bias                           # mask padded keys
    m = jnp.max(scores, axis=-1, keepdims=True)
    p = jnp.exp(scores - m)
    p = p * pl.reciprocal(jnp.sum(p, axis=-1, keepdims=True), approx=True)

    ctx = jnp.dot(p.astype(jnp.bfloat16), v.astype(jnp.bfloat16),
                  preferred_element_type=jnp.float32)    # (S, H)
    attn = jnp.dot(ctx.astype(jnp.bfloat16), wo_ref[...],
                   preferred_element_type=jnp.float32)   # (S, H)
    h = _layernorm(h + attn)

    # --- feed-forward (bf16 MXU, f32 residual/ReLU/layernorm) ---
    ff = jnp.dot(h.astype(jnp.bfloat16), w1_ref[...],
                 preferred_element_type=jnp.float32)     # (S, F)
    ff = jnp.maximum(ff, 0.0)
    ff2 = jnp.dot(ff.astype(jnp.bfloat16), w2_ref[...],
                  preferred_element_type=jnp.float32)    # (S, H)
    h = _layernorm(h + ff2)

    # --- affinity head on the VPU: CLS . head_w + b -> sigmoid (no N=1 matmul) ---
    cls = h[0:1, :]                                      # (1, H)
    logit = jnp.sum(cls * head_w_ref[...], axis=-1, keepdims=True) \
        + head_b_ref[0, 0]                               # (1, 1)
    out_ref[...] = _stable_sigmoid(logit)


def affinity_pallas(emb, mask, params):
    B, S, H = emb.shape
    mask3 = mask.reshape(B, 1, S).astype(jnp.float32)
    out = pl.pallas_call(
        affinity_kernel,
        out_shape=jax.ShapeDtypeStruct((B, 1, 1), jnp.float32),
        grid=(B,),
        in_specs=[
            pl.BlockSpec((None, S, H), lambda b: (b, 0, 0)),     # emb: one example/step
            pl.BlockSpec((None, 1, S), lambda b: (b, 0, 0)),     # attention mask
            pl.BlockSpec((H, 3 * H), lambda b: (0, 0)),          # fused QKV (resident)
            pl.BlockSpec((H, H), lambda b: (0, 0)),              # wo
            pl.BlockSpec((H, FFN), lambda b: (0, 0)),            # w1
            pl.BlockSpec((FFN, H), lambda b: (0, 0)),            # w2
            pl.BlockSpec((1, H), lambda b: (0, 0)),              # head_w (VPU use)
            pl.BlockSpec(memory_space=pltpu.MemorySpace.SMEM),   # head_b scalar
        ],
        out_specs=pl.BlockSpec((None, 1, 1), lambda b: (b, 0, 0)),
        compiler_params=pltpu.CompilerParams(
            dimension_semantics=("parallel",)),                  # megacore on v7x
    )(emb, mask3, params['wqkv'], params['wo'], params['w1'], params['w2'],
      params['head_w'], params['head_b'])
    return out.reshape(B, 1)


def init_params(key):
    ks = jax.random.split(key, 12)
    s = 0.02
    f32 = jnp.float32
    wq = jax.random.normal(ks[3], (HIDDEN, HIDDEN), f32) * s
    wk = jax.random.normal(ks[4], (HIDDEN, HIDDEN), f32) * s
    wv = jax.random.normal(ks[5], (HIDDEN, HIDDEN), f32) * s
    return {
        'word_emb': jax.random.normal(ks[0], (VOCAB, HIDDEN), f32) * s,
        'type_emb': jax.random.normal(ks[1], (TYPE_VOCAB, HIDDEN), f32) * s,
        'pos_emb':  jax.random.normal(ks[2], (SEQ, HIDDEN), f32) * s,
        # MXU weights stored bf16 (QKV fused); accumulation stays f32 in-kernel.
        'wqkv': jnp.concatenate([wq, wk, wv], axis=1).astype(jnp.bfloat16),
        'wo': (jax.random.normal(ks[6], (HIDDEN, HIDDEN), f32) * s).astype(jnp.bfloat16),
        'w1': (jax.random.normal(ks[7], (HIDDEN, FFN), f32) * s).astype(jnp.bfloat16),
        'w2': (jax.random.normal(ks[8], (FFN, HIDDEN), f32) * s).astype(jnp.bfloat16),
        'head_w': jax.random.normal(ks[9], (1, HIDDEN), f32) * s,
        'head_b': jax.random.normal(ks[10], (1, 1), f32) * s,
    }


def forward(x, params):
    """x: int32 (B, 3, S) stacking [input_ids, token_type_ids, attention_mask]."""
    input_ids = x[:, 0, :]
    token_type_ids = x[:, 1, :]
    attention_mask = x[:, 2, :].astype(jnp.float32)
    # embedding gather is glue (data-dependent gather), done in plain JAX
    emb = (params['word_emb'][input_ids]
           + params['type_emb'][token_type_ids]
           + params['pos_emb'][None, :, :]).astype(jnp.float32)
    return affinity_pallas(emb, attention_mask, params)


def forward_reference(x, params):
    """Pure-JAX reference of the same math (same bf16 matmul casts), for checking."""
    input_ids = x[:, 0, :]
    token_type_ids = x[:, 1, :]
    mask = x[:, 2, :].astype(jnp.float32)
    h = (params['word_emb'][input_ids]
         + params['type_emb'][token_type_ids]
         + params['pos_emb'][None, :, :]).astype(jnp.float32)       # (B, S, H)
    bf = jnp.bfloat16
    qkv = jnp.einsum('bsh,hd->bsd', h.astype(bf), params['wqkv'],
                     preferred_element_type=jnp.float32)
    scale = 1.0 / jnp.sqrt(jnp.float32(HIDDEN))
    q = qkv[..., 0:HIDDEN] * scale
    k = qkv[..., HIDDEN:2 * HIDDEN]
    v = qkv[..., 2 * HIDDEN:3 * HIDDEN]
    scores = jnp.einsum('bqd,bkd->bqk', q.astype(bf), k.astype(bf),
                        preferred_element_type=jnp.float32)
    scores = scores + (1.0 - mask)[:, None, :] * (-1e9)
    m = jnp.max(scores, axis=-1, keepdims=True)
    p = jnp.exp(scores - m)
    p = p / jnp.sum(p, axis=-1, keepdims=True)
    ctx = jnp.einsum('bqk,bkd->bqd', p.astype(bf), v.astype(bf),
                     preferred_element_type=jnp.float32)
    attn = jnp.einsum('bsd,de->bse', ctx.astype(bf), params['wo'],
                      preferred_element_type=jnp.float32)
    h = _layernorm(h + attn)
    ff = jnp.maximum(jnp.einsum('bsh,hf->bsf', h.astype(bf), params['w1'],
                                preferred_element_type=jnp.float32), 0.0)
    h = _layernorm(h + jnp.einsum('bsf,fh->bsh', ff.astype(bf), params['w2'],
                                  preferred_element_type=jnp.float32))
    cls = h[:, 0, :]                                                # (B, H)
    logit = jnp.sum(cls * params['head_w'], axis=-1, keepdims=True) \
        + params['head_b'][0, 0]
    return _stable_sigmoid(logit)


if __name__ == "__main__":
    key = jax.random.PRNGKey(0)
    pkey, xkey = jax.random.split(key)
    params = init_params(pkey)

    ids = jax.random.randint(xkey, (BATCH, SEQ), 0, VOCAB, dtype=jnp.int32)
    token_types = jnp.zeros((BATCH, SEQ), dtype=jnp.int32)
    attn_mask = jnp.ones((BATCH, SEQ), dtype=jnp.int32)
    attn_mask = attn_mask.at[:, SEQ - 2:].set(0)     # some padding positions
    x = jnp.stack([ids, token_types, attn_mask], axis=1)   # (B, 3, S)

    out = jax.block_until_ready(forward(x, params))
    ref = jax.block_until_ready(forward_reference(x, params))

    assert out.shape == (BATCH, 1)
    # tolerance covers the approx-reciprocal softmax denominator and
    # Mosaic-vs-XLA f32 reduction-order differences (bf16 matmul casts match).
    assert jnp.allclose(out, ref, atol=2e-3, rtol=2e-3), (out, ref)
    print("KERNEL_OK")
</pallas_src>

<mosaic_0001>
module attributes {stable_mosaic.version = 11 : i64} {
  func.func @affinity_kernel(%arg0: i32, %arg1: memref<1x8x128xf32, #tpu.memory_space<vmem>>, %arg2: memref<1x1x8xf32, #tpu.memory_space<vmem>>, %arg3: memref<128x384xbf16, #tpu.memory_space<vmem>>, %arg4: memref<128x128xbf16, #tpu.memory_space<vmem>>, %arg5: memref<128x512xbf16, #tpu.memory_space<vmem>>, %arg6: memref<512x128xbf16, #tpu.memory_space<vmem>>, %arg7: memref<1x128xf32, #tpu.memory_space<vmem>>, %arg8: memref<1x1xf32, #tpu.memory_space<smem>>, %arg9: memref<1x1x1xf32, #tpu.memory_space<vmem>>) attributes {dimension_semantics = [#tpu.dimension_semantics<parallel>], iteration_bounds = array<i64: 2>, scalar_prefetch = 0 : i64, scratch_operands = 0 : i64, tpu.core_type = #tpu.core_type<tc>, window_params = [{transform_indices = @transform_0, window_bounds = array<i64: 1, 8, 128>}, {transform_indices = @transform_1, window_bounds = array<i64: 1, 1, 8>}, {pipeline_mode = #tpu.pipeline_mode<synchronous>, transform_indices = @transform_2, window_bounds = array<i64: 128, 384>}, {pipeline_mode = #tpu.pipeline_mode<synchronous>, transform_indices = @transform_3, window_bounds = array<i64: 128, 128>}, {pipeline_mode = #tpu.pipeline_mode<synchronous>, transform_indices = @transform_4, window_bounds = array<i64: 128, 512>}, {pipeline_mode = #tpu.pipeline_mode<synchronous>, transform_indices = @transform_5, window_bounds = array<i64: 512, 128>}, {pipeline_mode = #tpu.pipeline_mode<synchronous>, transform_indices = @transform_6, window_bounds = array<i64: 1, 128>}, {transform_indices = @transform_7, window_bounds = array<i64: 1, 1>}, {transform_indices = @transform_8, window_bounds = array<i64: 1, 1, 1>}]} {
    %c0 = arith.constant 0 : index
    %c0_0 = arith.constant 0 : index
    %c0_1 = arith.constant 0 : index
    %0 = vector.load %arg1[%c0, %c0_0, %c0_1] : memref<1x8x128xf32, #tpu.memory_space<vmem>>, vector<1x8x128xf32>
    %1 = vector.shape_cast %0 : vector<1x8x128xf32> to vector<8x128xf32>
    %c0_2 = arith.constant 0 : index
    %c0_3 = arith.constant 0 : index
    %c0_4 = arith.constant 0 : index
    %2 = vector.load %arg2[%c0_2, %c0_3, %c0_4] : memref<1x1x8xf32, #tpu.memory_space<vmem>>, vector<1x1x8xf32>
    %3 = vector.shape_cast %2 : vector<1x1x8xf32> to vector<1x8xf32>
    %cst = arith.constant 1.000000e+00 : f32
    %4 = vector.broadcast %cst : f32 to vector<1x8xf32>
    %5 = arith.subf %4, %3 : vector<1x8xf32>
    %cst_5 = arith.constant -1.000000e+09 : f32
    %6 = vector.broadcast %cst_5 : f32 to vector<1x8xf32>
    %7 = arith.mulf %5, %6 : vector<1x8xf32>
    %8 = arith.truncf %1 : vector<8x128xf32> to vector<8x128xbf16>
    %c0_6 = arith.constant 0 : index
    %c0_7 = arith.constant 0 : index
    %9 = vector.load %arg3[%c0_6, %c0_7] : memref<128x384xbf16, #tpu.memory_space<vmem>>, vector<128x384xbf16>
    %cst_8 = arith.constant dense<0.000000e+00> : vector<8x384xf32>
    %10 = tpu.matmul %8, %9, %cst_8 {dimension_numbers = #tpu.dot_dimension_numbers<[1], [0], [0], [1], [0, 0, 1, 1], [], []>} : vector<8x128xbf16>, vector<128x384xbf16>, vector<8x384xf32> -> vector<8x384xf32>
    %cst_9 = arith.constant 1.280000e+02 : f32
    %11 = math.sqrt %cst_9 : f32
    %cst_10 = arith.constant 1.000000e+00 : f32
    %12 = arith.divf %cst_10, %11 : f32
    %13 = vector.extract_strided_slice %10 {offsets = [0, 0], sizes = [8, 128], strides = [1, 1]} : vector<8x384xf32> to vector<8x128xf32>
    %14 = vector.broadcast %12 : f32 to vector<8x128xf32>
    %15 = arith.mulf %13, %14 : vector<8x128xf32>
    %16 = vector.extract_strided_slice %10 {offsets = [0, 128], sizes = [8, 128], strides = [1, 1]} : vector<8x384xf32> to vector<8x128xf32>
    %17 = vector.extract_strided_slice %10 {offsets = [0, 256], sizes = [8, 128], strides = [1, 1]} : vector<8x384xf32> to vector<8x128xf32>
    %18 = arith.truncf %15 : vector<8x128xf32> to vector<8x128xbf16>
    %19 = arith.truncf %16 : vector<8x128xf32> to vector<8x128xbf16>
    %cst_11 = arith.constant dense<0.000000e+00> : vector<8x8xf32>
    %20 = tpu.matmul %18, %19, %cst_11 {dimension_numbers = #tpu.dot_dimension_numbers<[1], [1], [0], [0], [0, 0, 1, 0], [], []>} : vector<8x128xbf16>, vector<8x128xbf16>, vector<8x8xf32> -> vector<8x8xf32>
    %21 = vector.broadcast %7 : vector<1x8xf32> to vector<8x8xf32>
    %22 = arith.addf %20, %21 : vector<8x8xf32>
    %cst_12 = arith.constant dense<0xFF800000> : vector<8xf32>
    %23 = vector.multi_reduction <maximumf>, %22, %cst_12 [1] : vector<8x8xf32> to vector<8xf32>
    %24 = vector.shape_cast %23 : vector<8xf32> to vector<8x1xf32>
    %25 = vector.broadcast %24 : vector<8x1xf32> to vector<8x8xf32>
    %26 = arith.subf %22, %25 : vector<8x8xf32>
    %27 = math.exp %26 : vector<8x8xf32>
    %cst_13 = arith.constant dense<0.000000e+00> : vector<8xf32>
    %28 = vector.multi_reduction <add>, %27, %cst_13 [1] : vector<8x8xf32> to vector<8xf32>
    %29 = vector.shape_cast %28 : vector<8xf32> to vector<8x1xf32>
    %30 = tpu.reciprocal %29 {approx = true} : vector<8x1xf32> -> vector<8x1xf32>
    %31 = vector.broadcast %30 : vector<8x1xf32> to vector<8x8xf32>
    %32 = arith.mulf %27, %31 : vector<8x8xf32>
    %33 = arith.truncf %32 : vector<8x8xf32> to vector<8x8xbf16>
    %34 = arith.truncf %17 : vector<8x128xf32> to vector<8x128xbf16>
    %cst_14 = arith.constant dense<0.000000e+00> : vector<8x128xf32>
    %35 = tpu.matmul %33, %34, %cst_14 {dimension_numbers = #tpu.dot_dimension_numbers<[1], [0], [0], [1], [0, 0, 1, 1], [], []>} : vector<8x8xbf16>, vector<8x128xbf16>, vector<8x128xf32> -> vector<8x128xf32>
    %36 = arith.truncf %35 : vector<8x128xf32> to vector<8x128xbf16>
    %c0_15 = arith.constant 0 : index
    %c0_16 = arith.constant 0 : index
    %37 = vector.load %arg4[%c0_15, %c0_16] : memref<128x128xbf16, #tpu.memory_space<vmem>>, vector<128x128xbf16>
    %cst_17 = arith.constant dense<0.000000e+00> : vector<8x128xf32>
    %38 = tpu.matmul %36, %37, %cst_17 {dimension_numbers = #tpu.dot_dimension_numbers<[1], [0], [0], [1], [0, 0, 1, 1], [], []>} : vector<8x128xbf16>, vector<128x128xbf16>, vector<8x128xf32> -> vector<8x128xf32>
    %39 = arith.addf %1, %38 : vector<8x128xf32>
    %cst_18 = arith.constant dense<0.000000e+00> : vector<8xf32>
    %40 = vector.multi_reduction <add>, %39, %cst_18 [1] : vector<8x128xf32> to vector<8xf32>
    %41 = vector.shape_cast %40 : vector<8xf32> to vector<8x1xf32>
    %cst_19 = arith.constant 1.280000e+02 : f32
    %42 = vector.broadcast %cst_19 : f32 to vector<8x1xf32>
    %43 = arith.divf %41, %42 : vector<8x1xf32>
    %44 = vector.broadcast %43 : vector<8x1xf32> to vector<8x128xf32>
    %45 = arith.subf %39, %44 : vector<8x128xf32>
    %46 = arith.mulf %45, %45 : vector<8x128xf32>
    %cst_20 = arith.constant dense<0.000000e+00> : vector<8xf32>
    %47 = vector.multi_reduction <add>, %46, %cst_20 [1] : vector<8x128xf32> to vector<8xf32>
    %48 = vector.shape_cast %47 : vector<8xf32> to vector<8x1xf32>
    %cst_21 = arith.constant 1.280000e+02 : f32
    %49 = vector.broadcast %cst_21 : f32 to vector<8x1xf32>
    %50 = arith.divf %48, %49 : vector<8x1xf32>
    %51 = vector.broadcast %43 : vector<8x1xf32> to vector<8x128xf32>
    %52 = arith.subf %39, %51 : vector<8x128xf32>
    %cst_22 = arith.constant 9.99999996E-13 : f32
    %53 = vector.broadcast %cst_22 : f32 to vector<8x1xf32>
    %54 = arith.addf %50, %53 : vector<8x1xf32>
    %55 = math.rsqrt %54 : vector<8x1xf32>
    %56 = vector.broadcast %55 : vector<8x1xf32> to vector<8x128xf32>
    %57 = arith.mulf %52, %56 : vector<8x128xf32>
    %58 = arith.truncf %57 : vector<8x128xf32> to vector<8x128xbf16>
    %c0_23 = arith.constant 0 : index
    %c0_24 = arith.constant 0 : index
    %59 = vector.load %arg5[%c0_23, %c0_24] : memref<128x512xbf16, #tpu.memory_space<vmem>>, vector<128x512xbf16>
    %cst_25 = arith.constant dense<0.000000e+00> : vector<8x512xf32>
    %60 = tpu.matmul %58, %59, %cst_25 {dimension_numbers = #tpu.dot_dimension_numbers<[1], [0], [0], [1], [0, 0, 1, 1], [], []>} : vector<8x128xbf16>, vector<128x512xbf16>, vector<8x512xf32> -> vector<8x512xf32>
    %cst_26 = arith.constant 0.000000e+00 : f32
    %61 = vector.broadcast %cst_26 : f32 to vector<8x512xf32>
    %62 = arith.maximumf %60, %61 : vector<8x512xf32>
    %63 = arith.truncf %62 : vector<8x512xf32> to vector<8x512xbf16>
    %c0_27 = arith.constant 0 : index
    %c0_28 = arith.constant 0 : index
    %64 = vector.load %arg6[%c0_27, %c0_28] : memref<512x128xbf16, #tpu.memory_space<vmem>>, vector<512x128xbf16>
    %cst_29 = arith.constant dense<0.000000e+00> : vector<8x128xf32>
    %65 = tpu.matmul %63, %64, %cst_29 {dimension_numbers = #tpu.dot_dimension_numbers<[1], [0], [0], [1], [0, 0, 1, 1], [], []>} : vector<8x512xbf16>, vector<512x128xbf16>, vector<8x128xf32> -> vector<8x128xf32>
    %66 = arith.addf %57, %65 : vector<8x128xf32>
    %cst_30 = arith.constant dense<0.000000e+00> : vector<8xf32>
    %67 = vector.multi_reduction <add>, %66, %cst_30 [1] : vector<8x128xf32> to vector<8xf32>
    %68 = vector.shape_cast %67 : vector<8xf32> to vector<8x1xf32>
    %cst_31 = arith.constant 1.280000e+02 : f32
    %69 = vector.broadcast %cst_31 : f32 to vector<8x1xf32>
    %70 = arith.divf %68, %69 : vector<8x1xf32>
    %71 = vector.broadcast %70 : vector<8x1xf32> to vector<8x128xf32>
    %72 = arith.subf %66, %71 : vector<8x128xf32>
    %73 = arith.mulf %72, %72 : vector<8x128xf32>
    %cst_32 = arith.constant dense<0.000000e+00> : vector<8xf32>
    %74 = vector.multi_reduction <add>, %73, %cst_32 [1] : vector<8x128xf32> to vector<8xf32>
    %75 = vector.shape_cast %74 : vector<8xf32> to vector<8x1xf32>
    %cst_33 = arith.constant 1.280000e+02 : f32
    %76 = vector.broadcast %cst_33 : f32 to vector<8x1xf32>
    %77 = arith.divf %75, %76 : vector<8x1xf32>
    %78 = vector.broadcast %70 : vector<8x1xf32> to vector<8x128xf32>
    %79 = arith.subf %66, %78 : vector<8x128xf32>
    %cst_34 = arith.constant 9.99999996E-13 : f32
    %80 = vector.broadcast %cst_34 : f32 to vector<8x1xf32>
    %81 = arith.addf %77, %80 : vector<8x1xf32>
    %82 = math.rsqrt %81 : vector<8x1xf32>
    %83 = vector.broadcast %82 : vector<8x1xf32> to vector<8x128xf32>
    %84 = arith.mulf %79, %83 : vector<8x128xf32>
    %85 = vector.extract_strided_slice %84 {offsets = [0, 0], sizes = [1, 128], strides = [1, 1]} : vector<8x128xf32> to vector<1x128xf32>
    %c0_35 = arith.constant 0 : index
    %c0_36 = arith.constant 0 : index
    %86 = vector.load %arg7[%c0_35, %c0_36] : memref<1x128xf32, #tpu.memory_space<vmem>>, vector<1x128xf32>
    %87 = arith.mulf %85, %86 : vector<1x128xf32>
    %cst_37 = arith.constant dense<0.000000e+00> : vector<1xf32>
    %88 = vector.multi_reduction <add>, %87, %cst_37 [1] : vector<1x128xf32> to vector<1xf32>
    %89 = vector.shape_cast %88 : vector<1xf32> to vector<1x1xf32>
    %c0_38 = arith.constant 0 : index
    %c0_39 = arith.constant 0 : index
    %90 = memref.load %arg8[%c0_38, %c0_39] : memref<1x1xf32, #tpu.memory_space<smem>>
    %91 = vector.broadcast %90 : f32 to vector<1x1xf32>
    %92 = arith.addf %89, %91 : vector<1x1xf32>
    %93 = math.absf %92 : vector<1x1xf32>
    %cst_40 = arith.constant 0.000000e+00 : f32
    %94 = vector.broadcast %cst_40 : f32 to vector<1x1xf32>
    %95 = arith.subf %94, %93 : vector<1x1xf32>
    %96 = math.exp %95 : vector<1x1xf32>
    %cst_41 = arith.constant 0.000000e+00 : f32
    %97 = vector.broadcast %cst_41 : f32 to vector<1x1xf32>
    %98 = arith.cmpf oge, %92, %97 : vector<1x1xf32>
    %cst_42 = arith.constant 1.000000e+00 : f32
    %99 = vector.broadcast %cst_42 : f32 to vector<1x1xf32>
    %100 = arith.addf %99, %96 : vector<1x1xf32>
    %cst_43 = arith.constant 1.000000e+00 : f32
    %101 = vector.broadcast %cst_43 : f32 to vector<1x1xf32>
    %102 = arith.divf %101, %100 : vector<1x1xf32>
    %cst_44 = arith.constant 1.000000e+00 : f32
    %103 = vector.broadcast %cst_44 : f32 to vector<1x1xf32>
    %104 = arith.addf %103, %96 : vector<1x1xf32>
    %105 = arith.divf %96, %104 : vector<1x1xf32>
    %106 = arith.select %98, %102, %105 : vector<1x1xi1>, vector<1x1xf32>
    %c0_45 = arith.constant 0 : index
    %c0_46 = arith.constant 0 : index
    %c0_47 = arith.constant 0 : index
    %107 = vector.load %arg9[%c0_45, %c0_46, %c0_47] : memref<1x1x1xf32, #tpu.memory_space<vmem>>, vector<1x1x1xf32>
    %108 = vector.shape_cast %107 : vector<1x1x1xf32> to vector<1x1xf32>
    %109 = vector.shape_cast %106 : vector<1x1xf32> to vector<1x1x1xf32>
    tpu.vector_store %arg9[%c0_45, %c0_46, %c0_47], %109 {strides = array<i32>} : memref<1x1x1xf32, #tpu.memory_space<vmem>>, vector<1x1x1xf32>,
    return
  }
  func.func @transform_0(%arg0: i32) -> (i32, i32, i32) {
    %c0_i32 = arith.constant 0 : i32
    %c0_i32_0 = arith.constant 0 : i32
    %c0_i32_1 = arith.constant 0 : i32
    return %arg0, %c0_i32, %c0_i32_0 : i32, i32, i32
  }
  func.func @transform_1(%arg0: i32) -> (i32, i32, i32) {
    %c0_i32 = arith.constant 0 : i32
    %c0_i32_0 = arith.constant 0 : i32
    %c0_i32_1 = arith.constant 0 : i32
    return %arg0, %c0_i32, %c0_i32_0 : i32, i32, i32
  }
  func.func @transform_2(%arg0: i32) -> (i32, i32) {
    %c0_i32 = arith.constant 0 : i32
    %c0_i32_0 = arith.constant 0 : i32
    %c0_i32_1 = arith.constant 0 : i32
    return %c0_i32, %c0_i32_0 : i32, i32
  }
  func.func @transform_3(%arg0: i32) -> (i32, i32) {
    %c0_i32 = arith.constant 0 : i32
    %c0_i32_0 = arith.constant 0 : i32
    %c0_i32_1 = arith.constant 0 : i32
    return %c0_i32, %c0_i32_0 : i32, i32
  }
  func.func @transform_4(%arg0: i32) -> (i32, i32) {
    %c0_i32 = arith.constant 0 : i32
    %c0_i32_0 = arith.constant 0 : i32
    %c0_i32_1 = arith.constant 0 : i32
    return %c0_i32, %c0_i32_0 : i32, i32
  }
  func.func @transform_5(%arg0: i32) -> (i32, i32) {
    %c0_i32 = arith.constant 0 : i32
    %c0_i32_0 = arith.constant 0 : i32
    %c0_i32_1 = arith.constant 0 : i32
    return %c0_i32, %c0_i32_0 : i32, i32
  }
  func.func @transform_6(%arg0: i32) -> (i32, i32) {
    %c0_i32 = arith.constant 0 : i32
    %c0_i32_0 = arith.constant 0 : i32
    %c0_i32_1 = arith.constant 0 : i32
    return %c0_i32, %c0_i32_0 : i32, i32
  }
  func.func @transform_7(%arg0: i32) -> (i32, i32) {
    %c0_i32 = arith.constant 0 : i32
    %c0_i32_0 = arith.constant 0 : i32
    %c0_i32_1 = arith.constant 0 : i32
    return %c0_i32, %c0_i32_0 : i32, i32
  }
  func.func @transform_8(%arg0: i32) -> (i32, i32, i32) {
    %c0_i32 = arith.constant 0 : i32
    %c0_i32_0 = arith.constant 0 : i32
    %c0_i32_1 = arith.constant 0 : i32
    return %arg0, %c0_i32, %c0_i32_0 : i32, i32, i32
  }
}

</mosaic_0001>

<bundles_post_ra>
// kernel: tpu_custom_call.1
= control target key start
LH: loop header
LB: loop body
LE: loop exit
PB: predicated region body
PF: predicated region fallthrough
CT: control target
= control target key end

     0   :  { %s2604_s0 = inlined_call_operand.hbm [shape: f32[2,8,128], index: 0, kind: input, shape index: {}]   ;;  %s2605_s1 = inlined_call_operand.vmem [shape: f32[2,1,8], index: 1, kind: input, shape index: {}]   ;;  %s2606_s2 = inlined_call_operand.hbm [shape: bf16[128,384], index: 2, kind: input, shape index: {}]   ;;  %s2607_s3 = inlined_call_operand.hbm [shape: bf16[128,128], index: 3, kind: input, shape index: {}]   ;;  %s2608_s4 = inlined_call_operand.hbm [shape: bf16[128,512], index: 4, kind: input, shape index: {}]   ;;  %s2609_s5 = inlined_call_operand.hbm [shape: bf16[512,128], index: 5, kind: input, shape index: {}]   ;;  %s2610_s6 = inlined_call_operand.vmem [shape: f32[1,128], index: 6, kind: input, shape index: {}]   ;;  %s2611_s7 = inlined_call_operand.<no memory space> [shape: f32[1,1], index: 7, kind: input, shape index: {}]   ;;  %s2612_s8 = inlined_call_operand.vmem [shape: f32[2,1,1], index: 8, kind: output, shape index: {}]  }
   0x1   :  { %13 = sst [smem:[#allocation2]] %s2611_s7 }
   0x2   :  { %14 = vsyncpa [#allocation4], 0 }
   0x3   :  { %16 = vsyncpa [#allocation4 + $0x1], 0 }
   0x4   :  { %17 = vsyncpa [#allocation6], 0 }
   0x5   :  { %18 = vsyncpa [#allocation9], 0  ;;  %s2326_s29 = smov 0   ;;  %s2328_s30 = smov 0  }
   0x6   :  { %s2330_s9 = smov 0   ;;  %s2332_s10 = smov 0  }
   0x7 LB: > { %s2264_s7 = smov [#allocation5]   ;;  %s2347_s12 = sadd.s32 4294967295, %s2262_s10   ;;  %s2262_s10 = sphi %s2332_s10, %s2629_s10   ;;  %s2258_s9 = sphi %s2330_s9, %s2628_s9   ;;  %s2254_s30 = sphi %s2328_s30, %s2627_s30   ;;  %s2250_s29 = sphi %s2326_s29, %s2626_s29  }
   0x8   : > { %s245_s11 = sshll.u32 %s2264_s7, 4  ;;  %p1626_p0 = scmp.ge.s32.totalorder %s2262_s10, 1  ;;  %s2352_s11 = int_to_ptr.vmem [resolvable:$true] %s245_s11 }
   0x9   : > { %p2613_p1 = scmp.eq.s32.totalorder %s2347_s12, 0  ;;  %p233_p2 = scmp.lt.s32.totalorder %s2262_s10, 3 }
   0xa   : > { %s2265_s14 = smov [#allocation8]   ;;  %s2266_s17 = smov [#allocation7]  }
   0xb   : > { %p2354_p3 = pnand %p1626_p0, %p233_p2  ;;  %s271_s15 = sshll.u32 %s2265_s14, 4  ;;  %s2366_s15 = int_to_ptr.vmem [resolvable:$true] %s271_s15 }
   0xc   : > { %s2368_s18 = sshll.u32 %s2266_s17, 4  ;;  %s2078_s21 = scalar_lea.hbm %s2606_s2, 3072  ;;  %s259_s18 = int_to_ptr.vmem [resolvable:$true] %s2368_s18 }
   0xd   : > { %s2615_s13 = scalar_select %p2354_p3, 1, 0 }
   0xe   : > { %p1875_p4 = pneg %p2354_p3  ;;  %p2079_p6 = scmp.ne.s32.totalorder %s2606_s2, %s2078_s21 }
   0xf   : > { %p2085_p10 = scmp.lt.u32.totalorder %s2078_s21, %s2606_s2 }
  0x10   : > { %p2362_p5 = pnand %p1875_p4, %p2613_p1 }
  0x12   : > { %p2378_p7 = pneg %p2362_p5 }
  0x14   : > { %p2081_p8 = pnand %p2378_p7, %p2079_p6 }
  0x16   : > { %p2082_p9 = pneg %p2081_p8 }
  0x18   : > { %p2087_p11 = pnand %p2085_p10, %p2082_p9 }
  0x1a   : > { %2090 = shalt.err (!%p2087_p11)
}
  0x1b   : > { %s2091_s27 = scalar_lea.vmem %s2352_s11, 3072  ;;  %p2099_p2 = scmp.lt.s32.totalorder %s2352_s11, %s2352_s11 }
  0x1c   : > { %p2092_p12 = scmp.ne.s32.totalorder %s2352_s11, %s2091_s27  ;;  %p2100_p4 = scmp.lt.s32.totalorder %s2091_s27, %s2091_s27 }
  0x1e   : > { %p2094_p13 = pnand %p2092_p12, %p2378_p7  ;;  %p2101_p6 = por %p2100_p4, %p2099_p2 }
  0x20   : > { %p2095_p0 = pneg %p2094_p13 }
  0x22   : > { %p2102_p8 = pnand %p2101_p6, %p2095_p0 }
  0x24   : > { %2105 = shalt.err (!%p2102_p8)
}
  0x25   : > { %s2267_s28 = smov 192   ;;  %s2268_s7 = smov 12  }
  0x26   : > { %1878 = dma.hbm_to_vmem [thread:$0]  (!%p2362_p5), %s2606_s2, 3072, %s2352_s11, [#allocation6], %s2267_s28, %s2267_s28, %s2268_s7  }
  0x27   : > { %s2106_s21 = scalar_lea.hbm %s2608_s4, 4096 }
  0x28   : > { %p2107_p9 = scmp.ne.s32.totalorder %s2608_s4, %s2106_s21  ;;  %p2113_p12 = scmp.lt.u32.totalorder %s2106_s21, %s2608_s4 }
  0x2a   : > { %p2109_p10 = pnand %p2107_p9, %p2378_p7 }
  0x2c   : > { %p2110_p11 = pneg %p2109_p10 }
  0x2e   : > { %p2115_p13 = pnand %p2113_p12, %p2110_p11 }
  0x30   : > { %2118 = shalt.err (!%p2115_p13)
}
  0x31   : > { %s2119_s11 = scalar_lea.vmem %s2366_s15, 4096  ;;  %p2127_p6 = scmp.lt.s32.totalorder %s2366_s15, %s2366_s15 }
  0x32   : > { %p2120_p0 = scmp.ne.s32.totalorder %s2366_s15, %s2119_s11  ;;  %p2128_p8 = scmp.lt.s32.totalorder %s2119_s11, %s2119_s11 }
  0x34   : > { %p2122_p2 = pnand %p2120_p0, %p2378_p7  ;;  %p2129_p9 = por %p2128_p8, %p2127_p6 }
  0x36   : > { %p2123_p4 = pneg %p2122_p2 }
  0x38   : > { %p2130_p10 = pnand %p2129_p9, %p2123_p4 }
  0x3a   : > { %2133 = shalt.err (!%p2130_p10)
}
  0x3b   : > { %s2269_s27 = smov 256   ;;  %s2270_s28 = smov 16  }
  0x3c   : > { %1884 = dma.hbm_to_vmem [thread:$0]  (!%p2362_p5), %s2608_s4, 4096, %s2366_s15, [#allocation9], %s2269_s27, %s2269_s27, %s2270_s28  }
  0x3d   : > { %s2134_s20 = scalar_lea.hbm %s2607_s3, 1024 }
  0x3e   : > { %p2135_p11 = scmp.ne.s32.totalorder %s2607_s3, %s2134_s20  ;;  %p2141_p0 = scmp.lt.u32.totalorder %s2134_s20, %s2607_s3 }
  0x40   : > { %p2137_p12 = pnand %p2135_p11, %p2378_p7 }
  0x42   : > { %p2138_p13 = pneg %p2137_p12 }
  0x44   : > { %p2143_p2 = pnand %p2141_p0, %p2138_p13 }
  0x46   : > { %2146 = shalt.err (!%p2143_p2)
}
  0x47   : > { %s2147_s26 = scalar_lea.vmem %s259_s18, 1024  ;;  %p2155_p9 = scmp.lt.s32.totalorder %s259_s18, %s259_s18 }
  0x48   : > { %p2148_p4 = scmp.ne.s32.totalorder %s259_s18, %s2147_s26  ;;  %p2156_p10 = scmp.lt.s32.totalorder %s2147_s26, %s2147_s26 }
  0x4a   : > { %p2150_p6 = pnand %p2148_p4, %p2378_p7  ;;  %p2157_p1 = por %p2156_p10, %p2155_p9 }
  0x4c   : > { %p2151_p8 = pneg %p2150_p6 }
  0x4e   : > { %p2158_p3 = pnand %p2157_p1, %p2151_p8 }
  0x50   : > { %2161 = shalt.err (!%p2158_p3)
}
  0x51   : > { %s2271_s15 = smov 64   ;;  %s2272_s11 = smov 4  }
  0x52   : > { %1881 = dma.hbm_to_vmem [thread:$0]  (!%p2362_p5), %s2607_s3, 1024, %s259_s18, [#allocation6], %s2271_s15, %s2271_s15, %s2272_s11  }
  0x53   : > { %s2273_s7 = smov [#allocation10]   ;;  %s2162_s20 = scalar_lea.hbm %s2609_s5, 4096 }
  0x54   : > { %s284_s14 = sshll.u32 %s2273_s7, 4  ;;  %p2163_p1 = scmp.ne.s32.totalorder %s2609_s5, %s2162_s20  ;;  %s285_s14 = int_to_ptr.vmem [resolvable:$true] %s284_s14 }
  0x55   : > { %p2169_p12 = scmp.lt.u32.totalorder %s2162_s20, %s2609_s5 }
  0x56   : > { %p2165_p3 = pnand %p2163_p1, %p2378_p7 }
  0x58   : > { %p2166_p11 = pneg %p2165_p3 }
  0x5a   : > { %p2171_p13 = pnand %p2169_p12, %p2166_p11 }
  0x5c   : > { %2174 = shalt.err (!%p2171_p13)
}
  0x5d   : > { %s2175_s18 = scalar_lea.vmem %s285_s14, 4096  ;;  %p2183_p6 = scmp.lt.s32.totalorder %s285_s14, %s285_s14 }
  0x5e   : > { %p2176_p0 = scmp.ne.s32.totalorder %s285_s14, %s2175_s18  ;;  %p2184_p8 = scmp.lt.s32.totalorder %s2175_s18, %s2175_s18 }
  0x60   : > { %p2178_p2 = pnand %p2176_p0, %p2378_p7  ;;  %p2185_p9 = por %p2184_p8, %p2183_p6 }
  0x62   : > { %p2179_p4 = pneg %p2178_p2 }
  0x64   : > { %p2186_p10 = pnand %p2185_p9, %p2179_p4 }
  0x66   : > { %2189 = shalt.err (!%p2186_p10)
}
  0x67   : > { %1887 = dma.hbm_to_vmem [thread:$0]  (!%p2362_p5), %s2609_s5, 4096, %s285_s14, [#allocation9], %s2271_s15, %s2271_s15, %s2272_s11  }
  0x68   : > { %s2460_s24 = sadd.s32 1, %s2262_s10   ;;  %s31_s16 = sadd.s32 1, %s2258_s9 }
  0x69   : > { %s28_s28 = ssub.s32 %s2262_s10, %s2460_s24  ;;  %p38_p7 = scmp.ne.s32.totalorder %s2258_s9, %s2254_s30 }
  0x6a   : > { %p29_p1 = scmp.eq.s32.totalorder %s28_s28, 0  ;;  %p39_p3 = scmp.eq.s32.totalorder %s2262_s10, 0 }
  0x6b   : > { %p44_p11 = scmp.ne.s32.totalorder %s2254_s30, %s2250_s29  ;;  %p1896_p12 = scmp.lt.s32.totalorder %s2262_s10, 2 }
  0x6c   : > { %s2472_s7 = scalar_select %p29_p1, %s2258_s9, %s31_s16  }
  0x6d   : > { %p40_p13 = por %p39_p3, %p38_p7  ;;  %p2618_p0 = scmp.eq.s32.totalorder %s2347_s12, 0 }
  0x6e   : > { %s304_s19 = sand.u32 1, %s2258_s9   ;;  %s1633_s15 = sshll.u32 %s2262_s10, 7 }
  0x6f   : > { %p2476_p2 = por %p2618_p0, %p44_p11  ;;  %s1632_s11 = sshll.u32 %s304_s19, 3 }
  0x70   : > { %s2485_s21 = scalar_lea.hbm %s2604_s0, %s1633_s15  ;;  %s308_s29 = scalar_lea.vmem [#allocation3], %s1632_s11 }
  0x71   : > { %s315_s22 = sshll.u32 %s308_s29, 4  ;;  %p2487_p5 = pnand %p1896_p12, %p40_p13  ;;  %s2491_s22 = int_to_ptr.vmem [resolvable:$true] %s315_s22 }
  0x72   : > { %s305_s10 = scalar_lea.sflag [#allocation4], %s304_s19  ;;  %s2190_s25 = scalar_lea.hbm %s2485_s21, 128 }
  0x73   : > { %p2191_p4 = scmp.ne.s32.totalorder %s2485_s21, %s2190_s25  ;;  %p2192_p6 = pneg %p2487_p5 }
  0x74   : > { %s2195_s27 = scalar_lea.hbm %s2604_s0, 256  ;;  %p2196_p10 = scmp.lt.u32.totalorder %s2485_s21, %s2604_s0 }
  0x75   : > { %p2193_p8 = pnand %p2192_p6, %p2191_p4  ;;  %p2197_p7 = scmp.lt.u32.totalorder %s2195_s27, %s2190_s25 }
  0x76   : > { %p2199_p3 = scmp.lt.u32.totalorder %s2190_s25, %s2485_s21 }
  0x77   : > { %p2194_p9 = pneg %p2193_p8  ;;  %p2198_p1 = por %p2197_p7, %p2196_p10 }
  0x79   : > { %p2200_p11 = por %p2199_p3, %p2198_p1 }
  0x7b   : > { %p2201_p12 = pnand %p2200_p11, %p2194_p9 }
  0x7d   : > { %2204 = shalt.err (!%p2201_p12)
}
  0x7e   : > { %s2205_s19 = scalar_lea.vmem %s2491_s22, 128  ;;  %s2274_s15 = smov [#allocation3]  }
  0x7f   : > { %p2206_p13 = scmp.ne.s32.totalorder %s2491_s22, %s2205_s19  ;;  %s2210_s11 = sshll.u32 %s2274_s15, 4  ;;  %s2211_s11 = int_to_ptr.vmem [resolvable:$false] %s2210_s11 }
  0x80   : > { %s2212_s14 = scalar_lea.vmem %s2211_s11, 256  ;;  %p2213_p8 = scmp.lt.s32.totalorder %s2491_s22, %s2211_s11 }
  0x81   : > { %p2208_p0 = pnand %p2206_p13, %p2192_p6  ;;  %p2214_p10 = scmp.lt.s32.totalorder %s2212_s14, %s2205_s19 }
  0x83   : > { %p2209_p4 = pneg %p2208_p0  ;;  %p2215_p7 = por %p2214_p10, %p2213_p8 }
  0x85   : > { %p2216_p1 = pnand %p2215_p7, %p2209_p4 }
  0x87   : > { %2219 = shalt.err (!%p2216_p1)
}
  0x88   : > { %1891 = dma.hbm_to_vmem [thread:$0]  (!%p2487_p5), %s2485_s21, 128, %s2491_s22, %s305_s10  }
  0x89   : > { %p2621_p9 = scmp.ne.s32.totalorder %s2615_s13, 0 }
  0x8a   : > { %s332_s20 = sand.u32 (!%p2621_p9), 1, %s2254_s30  }
  0x8b   : > { %330 = sbr.rel (%p2621_p9) target bundleno = 2602 (0xa2a), region = 52  ;;  %s2521_s29 = sshll.u32 (!%p2621_p9), %s332_s20, 3 }
  0x8c   : > { %s333_s25 = scalar_lea.sflag (!%p2621_p9), [#allocation4], %s332_s20  ;;  %s336_s18 = scalar_lea.vmem (!%p2621_p9), [#allocation3], %s2521_s29 }
  0x92   : > { %2237 = dma.done.wait (%p2476_p2), %s333_s25, 128  }
  0x93   : > { %2239 = vsyncadd (%p2476_p2), %s333_s25, 4294967168  ;;  %p2622_p6 = scmp.eq.s32.totalorder %s2347_s12, 0 }
  0x95   : > { %2241 = dma.done.wait (%p2622_p6), [#allocation6], 4096   ;;  %p2623_p5 = pmov %p2622_p6 }
  0x97   : > { %2243 = vsyncadd (%p2623_p5), [#allocation6], 4294963200  ;;  %p2624_p3 = pmov %p2623_p5 }
  0x99   : > { %2245 = dma.done.wait (%p2624_p3), [#allocation9], 8192   ;;  %p2625_p11 = pmov %p2624_p3 }
  0x9a   : > { %v2275_v0 = vmov 0   ;;  %v2276_v1 = vmov 0.0   ;;  %v1946_v2 = vld [vmem:[#allocation5 + $0x4] ss:$12 sps:$4 sm:$0xff]   ;;  %v1948_v3 = vld [vmem:[#allocation5] ss:$12 sps:$4 sm:$0xff]   ;;  %v643_v41 = vlaneseq }
  0x9b   : > { %2247 = vsyncadd (%p2625_p11), [#allocation9], 4294959104  ;;  %590 = vmatprep.mubr.bf16.mxu0 %v2275_v0  ;;  %1805 = vmatprep.subr.bf16.mxu1 %v2276_v1  ;;  %v1949_v4 = vld [vmem:[#allocation5 + $0x1c] ss:$12 sps:$4 sm:$0xff]   ;;  %v1951_v5 = vld [vmem:[#allocation5 + $0x18] ss:$12 sps:$4 sm:$0xff]  }
  0x9c   : > { %558 = vmatprep.subr.bf16.mxu0 %v1946_v2  ;;  %v1952_v6 = vld [vmem:[#allocation5 + $0x34] ss:$12 sps:$4 sm:$0xff]   ;;  %v1954_v7 = vld [vmem:[#allocation5 + $0x30] ss:$12 sps:$4 sm:$0xff]   ;;  %v1955_v8 = vld [vmem:[#allocation5 + $0x4c] ss:$12 sps:$4 sm:$0xff]  }
  0x9d   : > { %559 = vmatpush1.bf16.msra.mxu0 %v1948_v3  ;;  %v1957_v9 = vld [vmem:[#allocation5 + $0x48] ss:$12 sps:$4 sm:$0xff]   ;;  %v1958_v11 = vld [vmem:[#allocation5 + $0x64] ss:$12 sps:$4 sm:$0xff]   ;;  %v1971_v12 = vld [vmem:[#allocation5 + $0x20] ss:$12 sps:$4 sm:$0xff]  }
  0x9e   : > { %560 = vmatprep.subr.bf16.mxu0 %v1949_v4  ;;  %v1970_v10 = vld [vmem:[#allocation5 + $0x8] ss:$12 sps:$4 sm:$0xff]   ;;  %v1960_v13 = vld [vmem:[#allocation5 + $0x60] ss:$12 sps:$4 sm:$0xff]   ;;  %v1963_v15 = vld [vmem:[#allocation5 + $0x78] ss:$12 sps:$4 sm:$0xff]  }
  0x9f   : > { %1806 = vmatpush3.bf16.msra.mxu1 %v1970_v10  ;;  %v1961_v14 = vld [vmem:[#allocation5 + $0x7c] ss:$12 sps:$4 sm:$0xff]   ;;  %v1972_v16 = vld [vmem:[#allocation5 + $0x38] ss:$12 sps:$4 sm:$0xff]   ;;  %v1964_v17 = vld [vmem:[#allocation5 + $0x94] ss:$12 sps:$4 sm:$0xff]  }
  0xa0   : > { %1807 = vmatprep.subr.bf16.mxu1 %v2276_v1  ;;  %v1973_v18 = vld [vmem:[#allocation5 + $0x50] ss:$12 sps:$4 sm:$0xff]   ;;  %v1967_v20 = vld [vmem:[#allocation5 + $0xac] ss:$12 sps:$4 sm:$0xff]   ;;  %v1974_v21 = vld [vmem:[#allocation5 + $0x68] ss:$12 sps:$4 sm:$0xff]  }
  0xa1   : > { %561 = vmatpush1.bf16.msra.mxu0 %v1951_v5  ;;  %v1966_v19 = vld [vmem:[#allocation5 + $0x90] ss:$12 sps:$4 sm:$0xff]   ;;  %v1969_v22 = vld [vmem:[#allocation5 + $0xa8] ss:$12 sps:$4 sm:$0xff]   ;;  %v1975_v24 = vld [vmem:[#allocation5 + $0x80] ss:$12 sps:$4 sm:$0xff]  }
  0xa2   : > { %562 = vmatprep.subr.bf16.mxu0 %v1952_v6  ;;  %v2543_v23 = vld [vmem:[%s336_s18] sm:$0xff]  ;;  %vm2277_vm0 = vmmov 0   ;;  %vm705_vm1 = vcmask 1043456   ;;  %p386_p2 = scmp.lt.s32.totalorder %s2347_s12, 1  ;;  %v644_v44 = vshrl.u32 %v643_v41, 7  ;;  %vm688_vm2 = vcmask 64512  }
  0xa3   : > { %1808 = vmatpush3.bf16.msra.mxu1 %v1971_v12  ;;  %v397_v25 = vpack.c.bf16 %v2543_v23, %v2543_v23  ;;  %v1976_v26 = vld [vmem:[#allocation5 + $0x98] ss:$12 sps:$4 sm:$0xff]   ;;  %v1977_v27 = vld [vmem:[#allocation5 + $0xb0] ss:$12 sps:$4 sm:$0xff]   ;;  %1821 = vmatprep.mubr.msk.bf16.mxu1 %vm2277_vm0, %v2276_v1  ;;  %v1979_v60 = vld [vmem:[#allocation7 + $0x8] sm:$0xff]   ;;  %vm1500_vm3 = vcmask 1040384  }
  0xa4   : > { %1809 = vmatprep.subr.bf16.mxu1 %v2276_v1  ;;  %s2631_s12 = smov (!%p386_p2, %s2347_s12), 1  ;;  %v645_v46 = vsub.s32 0, %v644_v44  ;;  %v1978_v59 = vld [vmem:[#allocation7] sm:$0xff]   ;;  %v1980_v61 = vld [vmem:[#allocation7 + $0x10] sm:$0xff]   ;;  %v1981_v62 = vld [vmem:[#allocation7 + $0x18] sm:$0xff]   ;;  %s1504_s10 = sld [smem:[#allocation2]] }
  0xa5   : > { %563 = vmatpush1.bf16.msra.mxu0 %v1954_v7  ;;  %s388_s21 = scalar_lea.vmem %s2605_s1, %s2631_s12  ;;  %v1982_v63 = vld [vmem:[#allocation7 + $0x20] sm:$0xff]   ;;  %v1983_v2 = vld [vmem:[#allocation7 + $0x28] sm:$0xff]   ;;  %v1984_v3 = vld [vmem:[#allocation7 + $0x30] sm:$0xff]   ;;  %s391_s16 = scalar_lea.vmem %s2612_s8, %s2631_s12  ;;  %vm1517_vm4 = vcmask 0  }
  0xa6   : > { %564 = vmatprep.subr.bf16.mxu0 %v1955_v8  ;;  %v394_v42 = vld [vmem:[%s388_s21] sm:$0x1]  ;;  %v1985_v8 = vld [vmem:[#allocation7 + $0x38] sm:$0xff]  }
  0xa7   : > { %1810 = vmatpush3.bf16.msra.mxu1 %v1972_v16  ;;  %v395_v43 = vsub.f32 1.0, %v394_v42  ;;  %v2016_v41 = vld [vmem:[#allocation8 + $0xa0] ss:$16 sps:$4 sm:$0xff]   ;;  %v2018_v42 = vld [vmem:[#allocation8 + $0xa4] ss:$16 sps:$4 sm:$0xff]  }
  0xa8   : > { %1811 = vmatprep.subr.bf16.mxu1 %v2276_v1  ;;  %v2021_v44 = vld [vmem:[#allocation8 + $0xac] ss:$16 sps:$4 sm:$0xff]  }
  0xa9   : > { %565 = vmatpush1.bf16.msra.mxu0 %v1957_v9  ;;  %v396_v45 = vmul.f32 -1e+09, %v395_v43  ;;  %v2019_v43 = vld [vmem:[#allocation8 + $0xa8] ss:$16 sps:$4 sm:$0xff]  }
  0xaa   : > { %566 = vmatprep.subr.bf16.mxu0 %v1958_v11 }
  0xab   : > { %1812 = vmatpush3.bf16.msra.mxu1 %v1973_v18  ;;  %v646_v47 = vrot.slane %v396_v45, %v645_v46  ;;  %v1986_v18 = vld [vmem:[#allocation8] ss:$16 sps:$4 sm:$0xff]   ;;  %v2024_v45 = vld [vmem:[#allocation8 + $0xc4] ss:$16 sps:$4 sm:$0xff]   ;;  %v2027_v46 = vld [vmem:[#allocation8 + $0xcc] ss:$16 sps:$4 sm:$0xff]  }
  0xac   : > { %1813 = vmatprep.subr.bf16.mxu1 %v2276_v1 }
  0xad   : > { %567 = vmatpush1.bf16.msra.mxu0 %v1960_v13 }
  0xae   : > { %568 = vmatprep.subr.bf16.mxu0 %v1961_v14 }
  0xaf   : > { %1814 = vmatpush3.bf16.msra.mxu1 %v1974_v21  ;;  %v1991_v21 = vld [vmem:[#allocation8 + $0xc] ss:$16 sps:$4 sm:$0xff]  }
  0xb0   : > { %1815 = vmatprep.subr.bf16.mxu1 %v2276_v1 }
  0xb1   : > { %569 = vmatpush1.bf16.msra.mxu0 %v1963_v15 }
  0xb2   : > { %570 = vmatprep.subr.bf16.mxu0 %v1964_v17 }
  0xb3   : > { %1816 = vmatpush3.bf16.msra.mxu1 %v1975_v24  ;;  %v1997_v24 = vld [vmem:[#allocation8 + $0x2c] ss:$16 sps:$4 sm:$0xff]  }
  0xb4   : > { %1817 = vmatprep.subr.bf16.mxu1 %v2276_v1 }
  0xb5   : > { %571 = vmatpush1.bf16.msra.mxu0 %v1966_v19  ;;  %v1988_v19 = vld [vmem:[#allocation8 + $0x4] ss:$16 sps:$4 sm:$0xff]  }
  0xb6   : > { %572 = vmatprep.subr.bf16.mxu0 %v1967_v20  ;;  %v1989_v20 = vld [vmem:[#allocation8 + $0x8] ss:$16 sps:$4 sm:$0xff]  }
  0xb7   : > { %1818 = vmatpush3.bf16.msra.mxu1 %v1976_v26  ;;  %v2000_v26 = vld [vmem:[#allocation8 + $0x44] ss:$16 sps:$4 sm:$0xff]  }
  0xb8   : > { %1819 = vmatprep.subr.bf16.mxu1 %v2276_v1 }
  0xb9   : > { %573 = vmatpush1.bf16.msra.mxu0 %v1969_v22  ;;  %v1994_v22 = vld [vmem:[#allocation8 + $0x24] ss:$16 sps:$4 sm:$0xff]  }
  0xba   : > { %1837 = vmatprep.subr.bf16.mxu0 %v2276_v1 }
  0xbb   : > { %1820 = vmatpush3.bf16.msra.mxu1 %v1977_v27  ;;  %v1998_v27 = vld [vmem:[#allocation8 + $0x40] ss:$16 sps:$4 sm:$0xff]  }
  0xbc   : > { %591 = vmatmul.mubr.bf16.vlgmr.msra.gmra.mrb[0].mxu0 %v397_v25  ;;  %1825 = vmatprep.subr.bf16.mxu1 %v2276_v1 }
  0xbd   : > { %1853 = vmatprep.mubr.msk.bf16.mxu0 %vm2277_vm0, %v2276_v1  ;;  %1838 = vmatpush3.bf16.msra.mxu0 %v1978_v59 }
  0xbe   : > { %1822 = vmatmul.mubr.bf16.vlgmr.msra.gmra.mrb[0].mxu1 %v397_v25  ;;  %1839 = vmatprep.subr.bf16.mxu0 %v2276_v1  ;;  %v1992_v25 = vld [vmem:[#allocation8 + $0x20] ss:$16 sps:$4 sm:$0xff]  }
  0xbf   : > { %1827 = vmatprep.mubr.msk.bf16.mxu1 %vm2277_vm0, %v2276_v1 }
  0xc1   : > { %1840 = vmatpush3.bf16.msra.mxu0 %v1979_v60  ;;  %v2036_v60 = vld [vmem:[#allocation10] sm:$0xff]  }
  0xc2   : > { %1841 = vmatprep.subr.bf16.mxu0 %v2276_v1 }
  0xc5   : > { %1842 = vmatpush3.bf16.msra.mxu0 %v1980_v61  ;;  %v2037_v61 = vld [vmem:[#allocation10 + $0x80] sm:$0xff]  }
  0xc6   : > { %1843 = vmatprep.subr.bf16.mxu0 %v2276_v1 }
  0xc9   : > { %1844 = vmatpush3.bf16.msra.mxu0 %v1981_v62 }
  0xca   : > { %1845 = vmatprep.subr.bf16.mxu0 %v2276_v1 }
  0xcd   : > { %1846 = vmatpush3.bf16.msra.mxu0 %v1982_v63  ;;  %v2038_v63 = vld [vmem:[#allocation10 + $0x48] sm:$0xff]  }
  0xce   : > { %1847 = vmatprep.subr.bf16.mxu0 %v2276_v1 }
  0xd1   : > { %1848 = vmatpush3.bf16.msra.mxu0 %v1983_v2  ;;  %v2039_v2 = vld [vmem:[#allocation10 + $0xc8] sm:$0xff]  }
  0xd2   : > { %1849 = vmatprep.subr.bf16.mxu0 %v2276_v1 }
  0xd5   : > { %1850 = vmatpush3.bf16.msra.mxu0 %v1984_v3  ;;  %v2040_v3 = vld [vmem:[#allocation10 + $0x8] sm:$0xff]  }
  0xd6   : > { %1851 = vmatprep.subr.bf16.mxu0 %v2276_v1 }
  0xd9   : > { %1852 = vmatpush3.bf16.msra.mxu0 %v1985_v8  ;;  %v2045_v8 = vld [vmem:[#allocation10 + $0x90] sm:$0xff]  }
  0xda   : > { %1101 = vmatprep.subr.bf16.mxu0 %v1991_v21  ;;  %v2059_v21 = vld [vmem:[#allocation10 + $0xf0] sm:$0xff]  }
 0x18f   : > { %v592_v28 = vpop.f32.mrb[0].mxu0 }
 0x190   : > { %v594_v29 = vpop.f32.mrb[1].mxu0  ;;  %v639_v33 = vmul.f32 0.088388346, %v592_v28  ;;  %v2001_v28 = vld [vmem:[#allocation8 + $0x48] ss:$16 sps:$4 sm:$0xff]  }
 0x191   : > { %v641_v30 = vpack.c.bf16 %v594_v29, %v594_v29  ;;  %v596_v31 = vpop.f32.mrb[2].mxu0  ;;  %v633_v35 = vpop.f32.mrb[0].mxu1  ;;  %v2006_v29 = vld [vmem:[#allocation8 + $0x64] ss:$16 sps:$4 sm:$0xff]  }
 0x192   : > { %v597_v32 = vpop.f32.mrb[3].mxu0  ;;  %v640_v34 = vpack.c.bf16 %v639_v33, %v639_v33  ;;  %v701_v36 = vpack.c.bf16 %v633_v35, %v633_v35  ;;  %v1823_v37 = vpop.f32.mrb[1].mxu1  ;;  %v2004_v31 = vld [vmem:[#allocation8 + $0x60] ss:$16 sps:$4 sm:$0xff]  }
 0x193   : > { %1826 = vmatpush3.bf16.xpose.msra.mxu1 %v641_v30  ;;  %v636_v38 = vpop.f32.mrb[2].mxu1  ;;  %v2009_v30 = vld [vmem:[#allocation8 + $0x6c] ss:$16 sps:$4 sm:$0xff]   ;;  %v2007_v32 = vld [vmem:[#allocation8 + $0x68] ss:$16 sps:$4 sm:$0xff]  }
 0x194   : > { %1831 = vmatprep.subr.bf16.mxu1 %v2276_v1  ;;  %v707_v39 = vsel %vm705_vm1, %v701_v36, 0  ;;  %v1824_v40 = vpop.f32.mrb[3].mxu1  ;;  %v2012_v37 = vld [vmem:[#allocation8 + $0x84] ss:$16 sps:$4 sm:$0xff]   ;;  %v2015_v38 = vld [vmem:[#allocation8 + $0x8c] ss:$16 sps:$4 sm:$0xff]  }
 0x195   : > { %v2013_v40 = vld [vmem:[#allocation8 + $0x88] ss:$16 sps:$4 sm:$0xff]  }
 0x19a   : > { %1828 = vmatmul.mubr.bf16.vlgmr.msra.gmra.mrb[4].mxu1 %v640_v34 }
 0x19b   : > { %1833 = vmatprep.mubr.msk.bf16.mxu1 %vm2277_vm0, %v2276_v1  ;;  %1832 = vmatpush3.bf16.msra.mxu1 %v707_v39  ;;  %v2010_v39 = vld [vmem:[#allocation8 + $0x80] ss:$16 sps:$4 sm:$0xff]  }
 0x19c   : > { %1060 = vmatprep.subr.bf16.mxu1 %v1988_v19  ;;  %v2057_v19 = vld [vmem:[#allocation10 + $0xa8] sm:$0xff]  }
 0x26d   : > { %v682_v48 = vpop.f32.mrb[4].mxu1 }
 0x26e   : > { %v683_v49 = vadd.f32 %v682_v48, %v646_v47  ;;  %v1829_v50 = vpop.f32.mrb[5].mxu1  ;;  %v2022_v47 = vld [vmem:[#allocation8 + $0xc0] ss:$16 sps:$4 sm:$0xff]   ;;  %v2025_v48 = vld [vmem:[#allocation8 + $0xc8] ss:$16 sps:$4 sm:$0xff]  }
 0x26f   : > { %v685_v51 = vpop.f32.mrb[6].mxu1  ;;  %v2033_v50 = vld [vmem:[#allocation8 + $0xec] ss:$16 sps:$4 sm:$0xff]  }
 0x270   : > { %v1830_v52 = vpop.f32.mrb[7].mxu1  ;;  %v689_v53 = vsel %vm688_vm2, %v683_v49, -inf  ;;  %v2028_v51 = vld [vmem:[#allocation8 + $0xe0] ss:$16 sps:$4 sm:$0xff]  }
 0x271   : > { %690 = vmax.xlane.f32.xlu0 %v689_v53  ;;  %v2031_v52 = vld [vmem:[#allocation8 + $0xe8] ss:$16 sps:$4 sm:$0xff]   ;;  %v2034_v53 = vld [vmem:[#allocation10 + $0x40] sm:$0xff]  }
 0x2fe   : > { %v691_v54 = vpop.xlane.xlu0 %690 }
 0x2ff   : > { %v692_v55 = vsub.f32 %v683_v49, %v691_v54  ;;  %v2030_v49 = vld [vmem:[#allocation8 + $0xe4] ss:$16 sps:$4 sm:$0xff]  }
 0x300   : > { %v2035_v54 = vld [vmem:[#allocation10 + $0xc0] sm:$0xff]  }
 0x301   : > { %v693_v56 = vmul.f32 1.442695, %v692_v55 }
 0x303   : > { %2066 = vpow2.f32 %v693_v56 }
 0x30d   : > { %v2067_v57 = vpop.eup %2066 }
 0x30e   : > { %v695_v58 = vsel %vm688_vm2, %v2067_v57, 0.0 }
 0x30f   : > { %696 = vadd.xlane.f32.xlu0 %v695_v58 }
 0x39c   : > { %v697_v4 = vpop.xlane.xlu0 %696 }
 0x39d   : > { %2068 = vrcp.f32 %v697_v4  ;;  %v2041_v4 = vld [vmem:[#allocation10 + $0x88] sm:$0xff]  }
 0x3a7   : > { %v2069_v5 = vpop.eup %2068 }
 0x3a8   : > { %v699_v6 = vmul.f32 %v2069_v5, %v2067_v57  ;;  %v2042_v5 = vld [vmem:[#allocation10 + $0x50] sm:$0xff]  }
 0x3aa   : > { %v700_v7 = vpack.c.bf16 %v699_v6, %v699_v6  ;;  %v2043_v6 = vld [vmem:[#allocation10 + $0xd0] sm:$0xff]  }
 0x3ac   : > { %1834 = vmatmul.mubr.msk.bf16.vlgmr.msra.gmra.mrb[8].mxu1 %vm688_vm2, %v700_v7  ;;  %v2044_v7 = vld [vmem:[#allocation10 + $0x10] sm:$0xff]  }
 0x3ad   : > { %1092 = vmatprep.mubr.bf16.mxu1 %v2275_v0  ;;  %1061 = vmatpush1.bf16.msra.mxu1 %v1986_v18  ;;  %v2056_v18 = vld [vmem:[#allocation10 + $0x28] sm:$0xff]  }
 0x3ae   : > { %1062 = vmatprep.subr.bf16.mxu1 %v1994_v22  ;;  %v2060_v22 = vld [vmem:[#allocation10 + $0x30] sm:$0xff]  }
 0x3b1   : > { %1063 = vmatpush1.bf16.msra.mxu1 %v1992_v25  ;;  %v2062_v25 = vld [vmem:[#allocation10 + $0x78] sm:$0xff]  }
 0x3b2   : > { %1064 = vmatprep.subr.bf16.mxu1 %v2000_v26  ;;  %v2064_v26 = vld [vmem:[#allocation10 + $0x38] sm:$0xff]  }
 0x3b5   : > { %1065 = vmatpush1.bf16.msra.mxu1 %v1998_v27 }
 0x3b6   : > { %1066 = vmatprep.subr.bf16.mxu1 %v2006_v29 }
 0x3b9   : > { %1067 = vmatpush1.bf16.msra.mxu1 %v2004_v31 }
 0x3ba   : > { %1068 = vmatprep.subr.bf16.mxu1 %v2012_v37 }
 0x3bd   : > { %1069 = vmatpush1.bf16.msra.mxu1 %v2010_v39 }
 0x3be   : > { %1070 = vmatprep.subr.bf16.mxu1 %v2018_v42 }
 0x3c1   : > { %1071 = vmatpush1.bf16.msra.mxu1 %v2016_v41 }
 0x3c2   : > { %1072 = vmatprep.subr.bf16.mxu1 %v2024_v45 }
 0x3c5   : > { %1073 = vmatpush1.bf16.msra.mxu1 %v2022_v47 }
 0x3c6   : > { %1074 = vmatprep.subr.bf16.mxu1 %v2030_v49 }
 0x3c9   : > { %1075 = vmatpush1.bf16.msra.mxu1 %v2028_v51 }
 0x3ca   : > { %1761 = vmatprep.subr.bf16.mxu1 %v2034_v53 }
 0x47f   : > { %v743_v9 = vpop.f32.mrb[8].mxu1 }
 0x480   : > { %v749_v10 = vpack.c.bf16 %v743_v9, %v743_v9  ;;  %v1835_v11 = vpop.f32.mrb[9].mxu1  ;;  %v2046_v9 = vld [vmem:[#allocation10 + $0x58] sm:$0xff]  }
 0x481   : > { %v746_v12 = vpop.f32.mrb[10].mxu1  ;;  %v2048_v11 = vld [vmem:[#allocation10 + $0x18] sm:$0xff]  }
 0x482   : > { %v1836_v13 = vpop.f32.mrb[11].mxu1  ;;  %1854 = vmatmul.mubr.bf16.vlgmr.msra.gmra.mrb[4].mxu0 %v749_v10  ;;  %v2047_v10 = vld [vmem:[#allocation10 + $0xd8] sm:$0xff]  }
 0x483   : > { %1133 = vmatprep.mubr.bf16.mxu0 %v2275_v0  ;;  %1102 = vmatpush1.bf16.msra.mxu0 %v1989_v20  ;;  %v1995_v0 = vld [vmem:[#allocation8 + $0x28] ss:$16 sps:$4 sm:$0xff]   ;;  %v2050_v13 = vld [vmem:[#allocation10 + $0x60] sm:$0xff]   ;;  %v2058_v20 = vld [vmem:[#allocation10 + $0x70] sm:$0xff]  }
 0x484   : > { %1103 = vmatprep.subr.bf16.mxu0 %v1997_v24  ;;  %v2049_v12 = vld [vmem:[#allocation10 + $0x98] sm:$0xff]   ;;  %v2061_v24 = vld [vmem:[#allocation10 + $0xb0] sm:$0xff]  }
 0x487   : > { %1104 = vmatpush1.bf16.msra.mxu0 %v1995_v0  ;;  %v2063_v0 = vld [vmem:[#allocation10 + $0xf8] sm:$0xff]  }
 0x555   : > { %v848_v1 = vpop.f32.mrb[4].mxu0 }
 0x556   : > { %v854_v14 = vadd.f32 %v848_v1, %v2543_v23  ;;  %v1855_v15 = vpop.f32.mrb[5].mxu0  ;;  %v2003_v23 = vld [vmem:[#allocation8 + $0x4c] ss:$16 sps:$4 sm:$0xff]   ;;  %v2051_v1 = vld [vmem:[#allocation10 + $0xe0] sm:$0xff]  }
 0x557   : > { %v851_v16 = vpop.f32.mrb[6].mxu0  ;;  %1105 = vmatprep.subr.bf16.mxu0 %v2003_v23  ;;  %v2053_v15 = vld [vmem:[#allocation10 + $0xa0] sm:$0xff]   ;;  %v2065_v23 = vld [vmem:[#allocation10 + $0xb8] sm:$0xff]  }
 0x558   : > { %855 = vadd.xlane.f32.xlu1 %v854_v14  ;;  %v1856_v17 = vpop.f32.mrb[7].mxu0  ;;  %1106 = vmatpush1.bf16.msra.mxu0 %v2001_v28  ;;  %v2054_v16 = vld [vmem:[#allocation10 + $0x68] sm:$0xff]  }
 0x559   : > { %1107 = vmatprep.subr.bf16.mxu0 %v2009_v30  ;;  %v2055_v17 = vld [vmem:[#allocation10 + $0xe8] sm:$0xff]  }
 0x55c   : > { %1108 = vmatpush1.bf16.msra.mxu0 %v2007_v32 }
 0x55d   : > { %1109 = vmatprep.subr.bf16.mxu0 %v2015_v38 }
 0x560   : > { %1110 = vmatpush1.bf16.msra.mxu0 %v2013_v40 }
 0x561   : > { %1111 = vmatprep.subr.bf16.mxu0 %v2021_v44 }
 0x564   : > { %1112 = vmatpush1.bf16.msra.mxu0 %v2019_v43 }
 0x565   : > { %1113 = vmatprep.subr.bf16.mxu0 %v2027_v46 }
 0x568   : > { %1114 = vmatpush1.bf16.msra.mxu0 %v2025_v48 }
 0x569   : > { %1115 = vmatprep.subr.bf16.mxu0 %v2033_v50 }
 0x56c   : > { %1116 = vmatpush1.bf16.msra.mxu0 %v2031_v52 }
 0x56d   : > { %1783 = vmatprep.subr.bf16.mxu0 %v2035_v54 }
 0x5e5   : > { %v856_v33 = vpop.xlane.xlu1 %855 }
 0x5e6   : > { %v858_v34 = vmul.f32 0.0078125, %v856_v33 }
 0x5e8   : > { %v859_v35 = vsub.f32 %v854_v14, %v858_v34  ;;  %v2052_v14 = vld [vmem:[#allocation10 + $0x20] sm:$0xff]  }
 0x5ea   : > { %v860_v36 = vmul.f32 %v859_v35, %v859_v35 }
 0x5ec   : > { %861 = vadd.xlane.f32.xlu1 %v860_v36 }
 0x679   : > { %v862_v55 = vpop.xlane.xlu1 %861 }
 0x67a   : > { %v863_v56 = vmul.f32 0.0078125, %v862_v55 }
 0x67c   : > { %v864_v57 = vadd.f32 1e-12, %v863_v56 }
 0x67e   : > { %2070 = vrsqrt.f32 %v864_v57 }
 0x688   : > { %v2071_v58 = vpop.eup %2070 }
 0x689   : > { %v2579_v59 = vmul.f32 %v2071_v58, %v859_v35 }
 0x68b   : > { %v867_v62 = vpack.c.bf16 %v2579_v59, %v2579_v59 }
 0x68d   : > { %1093 = vmatmul.mubr.bf16.vlgmr.msra.gmra.mrb[12].mxu1 %v867_v62  ;;  %1134 = vmatmul.mubr.bf16.vlgmr.msra.gmra.mrb[8].mxu0 %v867_v62 }
 0x68e   : > { %1762 = vmatpush3.bf16.msra.mxu1 %v2036_v60  ;;  %1784 = vmatpush3.bf16.msra.mxu0 %v2037_v61 }
 0x68f   : > { %1763 = vmatprep.subr.bf16.mxu1 %v2038_v63  ;;  %1785 = vmatprep.subr.bf16.mxu0 %v2039_v2  ;;  %v1498_v2 = vld [vmem:[%s2610_s6] sm:$0x1] }
 0x692   : > { %1764 = vmatpush3.bf16.msra.mxu1 %v2040_v3  ;;  %1786 = vmatpush3.bf16.msra.mxu0 %v2041_v4 }
 0x693   : > { %1765 = vmatprep.subr.bf16.mxu1 %v2042_v5  ;;  %1787 = vmatprep.subr.bf16.mxu0 %v2043_v6  ;;  %v1505_v5 = vstv %s1504_s10 }
 0x696   : > { %1766 = vmatpush3.bf16.msra.mxu1 %v2044_v7  ;;  %1788 = vmatpush3.bf16.msra.mxu0 %v2045_v8 }
 0x697   : > { %1767 = vmatprep.subr.bf16.mxu1 %v2046_v9  ;;  %1789 = vmatprep.subr.bf16.mxu0 %v2047_v10 }
 0x69a   : > { %1768 = vmatpush3.bf16.msra.mxu1 %v2048_v11  ;;  %1790 = vmatpush3.bf16.msra.mxu0 %v2049_v12 }
 0x69b   : > { %1769 = vmatprep.subr.bf16.mxu1 %v2050_v13  ;;  %1791 = vmatprep.subr.bf16.mxu0 %v2051_v1 }
 0x69e   : > { %1770 = vmatpush3.bf16.msra.mxu1 %v2052_v14  ;;  %1792 = vmatpush3.bf16.msra.mxu0 %v2053_v15 }
 0x69f   : > { %1771 = vmatprep.subr.bf16.mxu1 %v2054_v16  ;;  %1793 = vmatprep.subr.bf16.mxu0 %v2055_v17 }
 0x6a2   : > { %1772 = vmatpush3.bf16.msra.mxu1 %v2056_v18  ;;  %1794 = vmatpush3.bf16.msra.mxu0 %v2057_v19 }
 0x6a3   : > { %1773 = vmatprep.subr.bf16.mxu1 %v2058_v20  ;;  %1795 = vmatprep.subr.bf16.mxu0 %v2059_v21 }
 0x6a6   : > { %1774 = vmatpush3.bf16.msra.mxu1 %v2060_v22  ;;  %1796 = vmatpush3.bf16.msra.mxu0 %v2061_v24 }
 0x6a7   : > { %1775 = vmatprep.subr.bf16.mxu1 %v2062_v25  ;;  %1797 = vmatprep.subr.bf16.mxu0 %v2063_v0 }
 0x6aa   : > { %1776 = vmatpush3.bf16.msra.mxu1 %v2064_v26  ;;  %1798 = vmatpush3.bf16.msra.mxu0 %v2065_v23 }
 0x760   : > { %v1094_v27 = vpop.f32.mrb[12].mxu1  ;;  %v1135_v28 = vpop.f32.mrb[8].mxu0 }
 0x761   : > { %v1142_v29 = vmax.f32 %v1094_v27, 0.0  ;;  %v1144_v30 = vmax.f32 %v1135_v28, 0.0  ;;  %v1096_v31 = vpop.f32.mrb[13].mxu1  ;;  %v1137_v32 = vpop.f32.mrb[9].mxu0 }
 0x762   : > { %v1143_v33 = vmax.f32 %v1096_v31, 0.0  ;;  %v1145_v34 = vmax.f32 %v1137_v32, 0.0  ;;  %v1098_v35 = vpop.f32.mrb[14].mxu1  ;;  %v1139_v36 = vpop.f32.mrb[10].mxu0 }
 0x763   : > { %v1099_v37 = vpop.f32.mrb[15].mxu1  ;;  %v1140_v38 = vpop.f32.mrb[11].mxu0  ;;  %v1146_v41 = vpack.c.bf16 %v1142_v29, %v1142_v29  ;;  %v1148_v42 = vpack.c.bf16 %v1144_v30, %v1144_v30 }
 0x764   : > { %v1147_v39 = vpack.c.bf16 %v1143_v33, %v1143_v33  ;;  %v1149_v40 = vpack.c.bf16 %v1145_v34, %v1145_v34 }
 0x766   : > { %1438 = vmatprep.mubr.bf16.mxu1 %v1147_v39  ;;  %1478 = vmatprep.mubr.bf16.mxu0 %v1149_v40 }
 0x767   : > { %1439 = vmatmul.mubr.bf16.vlgmr.msra.gmra.mrb[16].mxu1 %v1146_v41  ;;  %1479 = vmatmul.mubr.bf16.vlgmr.msra.gmra.mrb[12].mxu0 %v1148_v42 }
 0x83a   : > { %v1777_v43 = vpop.f32.mrb[16].mxu1  ;;  %v1799_v44 = vpop.f32.mrb[12].mxu0 }
 0x83b   : > { %v1778_v45 = vpop.f32.mrb[17].mxu1  ;;  %v1800_v46 = vpop.f32.mrb[13].mxu0 }
 0x83c   : > { %v1779_v47 = vadd.f32 %v1778_v45, %v1777_v43  ;;  %v1801_v48 = vadd.f32 %v1800_v46, %v1799_v44  ;;  %v1780_v49 = vpop.f32.mrb[18].mxu1  ;;  %v1802_v50 = vpop.f32.mrb[14].mxu0 }
 0x83d   : > { %v1781_v51 = vpop.f32.mrb[19].mxu1  ;;  %v1803_v52 = vpop.f32.mrb[15].mxu0 }
 0x83e   : > { %v1481_v53 = vadd.f32 %v1801_v48, %v1779_v47 }
 0x840   : > { %v1486_v54 = vadd.f32 %v1481_v53, %v2579_v59 }
 0x842   : > { %1487 = vadd.xlane.f32.xlu0 %v1486_v54 }
 0x8cf   : > { %v1488_v55 = vpop.xlane.xlu0 %1487 }
 0x8d0   : > { %v1489_v56 = vmul.f32 0.0078125, %v1488_v55 }
 0x8d2   : > { %v1490_v57 = vsub.f32 %v1486_v54, %v1489_v56 }
 0x8d4   : > { %v1491_v58 = vmul.f32 %v1490_v57, %v1490_v57 }
 0x8d6   : > { %1492 = vadd.xlane.f32.xlu1 %v1491_v58 }
 0x963   : > { %v1493_v60 = vpop.xlane.xlu1 %1492 }
 0x964   : > { %v1494_v61 = vmul.f32 0.0078125, %v1493_v60 }
 0x966   : > { %v1495_v62 = vadd.f32 1e-12, %v1494_v61 }
 0x968   : > { %2072 = vrsqrt.f32 %v1495_v62 }
 0x972   : > { %v2073_v63 = vpop.eup %2072 }
 0x973   : > { %v1497_v3 = vmul.f32 %v2073_v63, %v1490_v57 }
 0x975   : > { %v1499_v4 = vmul.f32 %v1498_v2, %v1497_v3 }
 0x977   : > { %v1501_v59 = vsel %vm1500_vm3, %v1499_v4, 0.0 }
 0x978   : > { %1502 = vadd.xlane.f32.xlu0 %v1501_v59 }
 0xa05   : > { %v1503_v6 = vpop.xlane.xlu0 %1502 }
 0xa06   : > { %v1506_v7 = vadd.f32 %v1505_v5, %v1503_v6 }
 0xa08   : > { %v1507_v8 = vand.u32 2147483647, %v1506_v7  ;;  %vm1511_vm5 = vcmp.ge.f32.partialorder %v1506_v7, 0.0 }
 0xa0a   : > { %v1508_v9 = vsub.f32 0.0, %v1507_v8 }
 0xa0c   : > { %v1509_v10 = vmul.f32 1.442695, %v1508_v9 }
 0xa0e   : > { %2074 = vpow2.f32 %v1509_v10 }
 0xa18   : > { %v2075_v11 = vpop.eup %2074 }
 0xa19   : > { %v1512_v12 = vadd.f32 1.0, %v2075_v11 }
 0xa1b   : > { %2076 = vrcp.f32 %v1512_v12 }
 0xa25   : > { %v2077_v13 = vpop.eup %2076 }
 0xa26   : > { %v1515_v1 = vmul.f32 %v2077_v13, %v2075_v11 }
 0xa28   : > { %v1516_v14 = vsel %vm1511_vm5, %v2077_v13, %v1515_v1 }
 0xa29   : > { %1518 = vst.msk [vmem:[%s391_s16] sm:$0x1] %vm1517_vm4, %v1516_v14 }
 0xa2a PF: > { %p21_p12 = scmp.ge.s32.totalorder %s2460_s24, 4   ;;  %s2626_s29 = smov %s2254_s30 }
 0xa2b   : > { %s2627_s30 = smov %s2258_s9  ;;  %s2628_s9 = smov %s2472_s7 }
 0xa2c   : > { %s2629_s10 = smov %s2460_s24  ;;  %23 = sbr.rel (!%p21_p12) target bundleno = 7 (0x7), region = 111 }
 0xa33   :  { %1536 = vsyncpa [#allocation4], 1 }
 0xa34   :  { %1538 = vsyncpa [#allocation4 + $0x1], 1 }
 0xa35   :  { %1539 = vsyncpa [#allocation6], 1 }
 0xa36   :  { %1540 = vsyncpa [#allocation9], 1 }

</bundles_post_ra>
